<compile_context>
chip_gen: v5e
topology: v5e:2x2
jax: 0.10.0
libtpu: 0.0.40
codegen_flags: <defaults>
</compile_context>

<pallas_src>
import functools
import math

import jax
import jax.numpy as jnp
from jax import lax
from jax.experimental import pallas as pl
from jax.experimental.pallas import tpu as pltpu


def _row_l2_normalize(v, eps=1e-12):
    # Matches torch F.normalize(dim=1): v / max(||v||_2, eps), in rsqrt form.
    sumsq = jnp.sum(v * v, axis=1, keepdims=True)
    return v * lax.rsqrt(jnp.maximum(sumsq, eps * eps))


def _amsoftmax_kernel(x_ref, w_ref, lab_ref, logits_ref, cos_ref, *, m, s, tn):
    j = pl.program_id(1)                      # class-tile index

    x = x_ref[...].astype(jnp.float32)        # (tm, D) raw batch rows
    w = w_ref[...].astype(jnp.float32)        # (tn, D) raw class rows

    # Fused row-wise L2 normalization (exact: each tile contains full rows).
    xn = _row_l2_normalize(x)
    wn = _row_l2_normalize(w)

    # Contract the feature dim of both operands -> (tm, tn); feeds MXU without a
    # transpose of the weight tile.
    cos = lax.dot_general(
        xn, wn,
        dimension_numbers=(((1,), (1,)), ((), ())),
        preferred_element_type=jnp.float32,
    )
    cos = jnp.clip(cos, -1.0 + 1e-07, 1.0 - 1e-07)

    # Margin scatter fused into the scaled epilogue:
    #   logits[i, c] = s*cos - s*m   iff global class index c == label[i]
    #               = s*cos          otherwise
    col = lax.broadcasted_iota(jnp.int32, cos.shape, 1) + j * tn   # (tm, tn)
    lab = lab_ref[...]                                             # (tm, 1) int32
    scos = cos * jnp.float32(s)
    logits = jnp.where(col == lab, scos - jnp.float32(s * m), scos)

    cos_ref[...] = cos
    logits_ref[...] = logits


def amsoftmax_forward(x, weight, label, *, m=0.25, s=30.0, tm_max=256, tn_max=512):
    B, D = x.shape
    n_class, D2 = weight.shape
    assert D == D2

    x = x.astype(jnp.float32)
    weight = weight.astype(jnp.float32)
    lab2d = label.reshape(B, 1).astype(jnp.int32)

    # --- Tile selection (full-dim small blocks, else aligned tiles + padding) --
    if B <= tm_max:
        tm, Bp = B, B
    else:
        tm = tm_max
        Bp = pl.cdiv(B, tm) * tm
    if n_class <= tn_max:
        tn, Np = n_class, n_class
    else:
        tn = tn_max
        Np = pl.cdiv(n_class, tn) * tn

    if Bp != B:
        x = jnp.pad(x, ((0, Bp - B), (0, 0)))
        lab2d = jnp.pad(lab2d, ((0, Bp - B), (0, 0)), constant_values=-1)
    if Np != n_class:
        weight = jnp.pad(weight, ((0, Np - n_class), (0, 0)))

    cost = pl.CostEstimate(
        flops=2 * Bp * Np * D,
        transcendentals=Bp + Np,                       # rsqrt per row
        bytes_accessed=4 * (Bp * D + (Bp // tm) * Np * D + Bp + 2 * Bp * Np),
    )

    kernel = functools.partial(_amsoftmax_kernel, m=m, s=s, tn=tn)

    logits, cos_theta = pl.pallas_call(
        kernel,
        out_shape=(
            jax.ShapeDtypeStruct((Bp, Np), jnp.float32),
            jax.ShapeDtypeStruct((Bp, Np), jnp.float32),
        ),
        grid_spec=pltpu.PrefetchScalarGridSpec(
            num_scalar_prefetch=0,
            grid=(Bp // tm, Np // tn),
            in_specs=[
                pl.BlockSpec((tm, D), lambda i, j: (i, 0)),   # x: batch tile
                pl.BlockSpec((tn, D), lambda i, j: (j, 0)),   # W: class tile
                pl.BlockSpec((tm, 1), lambda i, j: (i, 0)),   # labels: batch tile
            ],
            out_specs=[
                pl.BlockSpec((tm, tn), lambda i, j: (i, j)),
                pl.BlockSpec((tm, tn), lambda i, j: (i, j)),
            ],
        ),
        compiler_params=pltpu.CompilerParams(
            dimension_semantics=("parallel", "parallel"),
        ),
        cost_estimate=cost,
    )(x, weight, lab2d)

    if Bp != B or Np != n_class:
        logits = logits[:B, :n_class]
        cos_theta = cos_theta[:B, :n_class]
    return logits, cos_theta


def amsoftmax_ref(x, weight, label, *, m=0.25, s=30.0):
    xn = _row_l2_normalize(x)
    wn = _row_l2_normalize(weight)
    cos = jnp.clip(xn @ wn.T, -1.0 + 1e-07, 1.0 - 1e-07)
    margin = jax.nn.one_hot(label, weight.shape[0], dtype=cos.dtype) * m
    return s * (cos - margin), cos


if __name__ == "__main__":
    # Small shapes consistent with the module (in_nodes=32, n_class=256, batch=4)
    B, in_nodes, n_class = 4, 32, 256
    m, s = 0.25, 30.0

    key = jax.random.PRNGKey(0)
    kx, kw, kl = jax.random.split(key, 3)

    x = jax.random.normal(kx, (B, in_nodes), dtype=jnp.float32)
    # deterministic xavier_normal_ init: std = sqrt(2 / (fan_in + fan_out))
    std = math.sqrt(2.0 / (in_nodes + n_class))
    weight = std * jax.random.normal(kw, (n_class, in_nodes), dtype=jnp.float32)
    label = jax.random.randint(kl, (B,), 0, n_class, dtype=jnp.int32)

    logits, cos_theta = amsoftmax_forward(x, weight, label, m=m, s=s)
    jax.block_until_ready((logits, cos_theta))

    ref_logits, ref_cos = amsoftmax_ref(x, weight, label, m=m, s=s)
    assert jnp.allclose(logits, ref_logits, atol=1e-4, rtol=1e-4)
    assert jnp.allclose(cos_theta, ref_cos, atol=1e-5, rtol=1e-5)

    print("KERNEL_OK")
</pallas_src>

<mosaic_0001>
module attributes {stable_mosaic.version = 11 : i64} {
  func.func @_amsoftmax_kernel(%arg0: i32, %arg1: i32, %arg2: memref<4x32xf32, #tpu.memory_space<vmem>>, %arg3: memref<256x32xf32, #tpu.memory_space<vmem>>, %arg4: memref<4x1xi32, #tpu.memory_space<vmem>>, %arg5: memref<4x256xf32, #tpu.memory_space<vmem>>, %arg6: memref<4x256xf32, #tpu.memory_space<vmem>>) attributes {dimension_semantics = [#tpu.dimension_semantics<parallel>, #tpu.dimension_semantics<parallel>], iteration_bounds = array<i64: 1, 1>, scalar_prefetch = 0 : i64, scratch_operands = 0 : i64, tpu.core_type = #tpu.core_type<tc>, window_params = [{transform_indices = @transform_0, window_bounds = array<i64: 4, 32>}, {transform_indices = @transform_1, window_bounds = array<i64: 256, 32>}, {transform_indices = @transform_2, window_bounds = array<i64: 4, 1>}, {transform_indices = @transform_3, window_bounds = array<i64: 4, 256>}, {transform_indices = @transform_4, window_bounds = array<i64: 4, 256>}]} {
    %c0 = arith.constant 0 : index
    %c0_0 = arith.constant 0 : index
    %0 = vector.load %arg2[%c0, %c0_0] : memref<4x32xf32, #tpu.memory_space<vmem>>, vector<4x32xf32>
    %c0_1 = arith.constant 0 : index
    %c0_2 = arith.constant 0 : index
    %1 = vector.load %arg3[%c0_1, %c0_2] : memref<256x32xf32, #tpu.memory_space<vmem>>, vector<256x32xf32>
    %2 = arith.mulf %0, %0 : vector<4x32xf32>
    %cst = arith.constant dense<0.000000e+00> : vector<4xf32>
    %3 = vector.multi_reduction <add>, %2, %cst [1] : vector<4x32xf32> to vector<4xf32>
    %4 = vector.shape_cast %3 : vector<4xf32> to vector<4x1xf32>
    %cst_3 = arith.constant 1.000000e-24 : f32
    %5 = vector.broadcast %cst_3 : f32 to vector<4x1xf32>
    %6 = arith.maximumf %4, %5 : vector<4x1xf32>
    %7 = math.rsqrt %6 : vector<4x1xf32>
    %8 = vector.broadcast %7 : vector<4x1xf32> to vector<4x32xf32>
    %9 = arith.mulf %0, %8 : vector<4x32xf32>
    %10 = arith.mulf %1, %1 : vector<256x32xf32>
    %cst_4 = arith.constant dense<0.000000e+00> : vector<256xf32>
    %11 = vector.multi_reduction <add>, %10, %cst_4 [1] : vector<256x32xf32> to vector<256xf32>
    %12 = vector.shape_cast %11 : vector<256xf32> to vector<256x1xf32>
    %cst_5 = arith.constant 1.000000e-24 : f32
    %13 = vector.broadcast %cst_5 : f32 to vector<256x1xf32>
    %14 = arith.maximumf %12, %13 : vector<256x1xf32>
    %15 = math.rsqrt %14 : vector<256x1xf32>
    %16 = vector.broadcast %15 : vector<256x1xf32> to vector<256x32xf32>
    %17 = arith.mulf %1, %16 : vector<256x32xf32>
    %cst_6 = arith.constant dense<0.000000e+00> : vector<4x256xf32>
    %18 = tpu.matmul %9, %17, %cst_6 {dimension_numbers = #tpu.dot_dimension_numbers<[1], [1], [0], [0], [0, 0, 1, 0], [], []>} : vector<4x32xf32>, vector<256x32xf32>, vector<4x256xf32> -> vector<4x256xf32>
    %cst_7 = arith.constant -0.99999988 : f32
    %cst_8 = arith.constant 0.99999988 : f32
    %19 = vector.broadcast %cst_7 : f32 to vector<4x256xf32>
    %20 = arith.maximumf %19, %18 : vector<4x256xf32>
    %21 = vector.broadcast %cst_8 : f32 to vector<4x256xf32>
    %22 = arith.minimumf %21, %20 : vector<4x256xf32>
    %23 = tpu.iota {dimensions = array<i32: 1>} : vector<4x256xi32>
    %c256_i32 = arith.constant 256 : i32
    %24 = arith.muli %arg1, %c256_i32 : i32
    %25 = vector.broadcast %24 : i32 to vector<4x256xi32>
    %26 = arith.addi %23, %25 : vector<4x256xi32>
    %c0_9 = arith.constant 0 : index
    %c0_10 = arith.constant 0 : index
    %27 = vector.load %arg4[%c0_9, %c0_10] : memref<4x1xi32, #tpu.memory_space<vmem>>, vector<4x1xi32>
    %cst_11 = arith.constant 3.000000e+01 : f32
    %28 = vector.broadcast %cst_11 : f32 to vector<4x256xf32>
    %29 = arith.mulf %22, %28 : vector<4x256xf32>
    %30 = vector.broadcast %27 : vector<4x1xi32> to vector<4x256xi32>
    %31 = arith.cmpi eq, %26, %30 : vector<4x256xi32>
    %cst_12 = arith.constant 7.500000e+00 : f32
    %32 = vector.broadcast %cst_12 : f32 to vector<4x256xf32>
    %33 = arith.subf %29, %32 : vector<4x256xf32>
    %34 = arith.select %31, %33, %29 : vector<4x256xi1>, vector<4x256xf32>
    %c0_13 = arith.constant 0 : index
    %c0_14 = arith.constant 0 : index
    %35 = vector.load %arg6[%c0_13, %c0_14] : memref<4x256xf32, #tpu.memory_space<vmem>>, vector<4x256xf32>
    tpu.vector_store %arg6[%c0_13, %c0_14], %22 {strides = array<i32>} : memref<4x256xf32, #tpu.memory_space<vmem>>, vector<4x256xf32>,
    %c0_15 = arith.constant 0 : index
    %c0_16 = arith.constant 0 : index
    %36 = vector.load %arg5[%c0_15, %c0_16] : memref<4x256xf32, #tpu.memory_space<vmem>>, vector<4x256xf32>
    tpu.vector_store %arg5[%c0_15, %c0_16], %34 {strides = array<i32>} : memref<4x256xf32, #tpu.memory_space<vmem>>, vector<4x256xf32>,
    return
  }
  func.func @transform_0(%arg0: i32, %arg1: i32) -> (i32, i32) {
    %c0_i32 = arith.constant 0 : i32
    %c0_i32_0 = arith.constant 0 : i32
    return %arg0, %c0_i32 : i32, i32
  }
  func.func @transform_1(%arg0: i32, %arg1: i32) -> (i32, i32) {
    %c0_i32 = arith.constant 0 : i32
    %c0_i32_0 = arith.constant 0 : i32
    return %arg1, %c0_i32 : i32, i32
  }
  func.func @transform_2(%arg0: i32, %arg1: i32) -> (i32, i32) {
    %c0_i32 = arith.constant 0 : i32
    %c0_i32_0 = arith.constant 0 : i32
    return %arg0, %c0_i32 : i32, i32
  }
  func.func @transform_3(%arg0: i32, %arg1: i32) -> (i32, i32) {
    %c0_i32 = arith.constant 0 : i32
    return %arg0, %arg1 : i32, i32
  }
  func.func @transform_4(%arg0: i32, %arg1: i32) -> (i32, i32) {
    %c0_i32 = arith.constant 0 : i32
    return %arg0, %arg1 : i32, i32
  }
}

</mosaic_0001>

<bundles_post_ra>
// kernel: tpu_custom_call.1
= control target key start
LH: loop header
LB: loop body
LE: loop exit
PB: predicated region body
PF: predicated region fallthrough
CT: control target
= control target key end

     0   :  { %10 = vsyncpa [#allocation3], 0  ;;  %vm100_vm0 = vcmask 261120   ;;  %s1869_s0 = inlined_call_operand.vmem [shape: f32[4,32], index: 0, kind: input, shape index: {}]   ;;  %s1870_s1 = inlined_call_operand.vmem [shape: f32[256,32], index: 1, kind: input, shape index: {}]   ;;  %s1871_s2 = inlined_call_operand.vmem [shape: s32[4,1], index: 2, kind: input, shape index: {}]   ;;  %s1872_s3 = inlined_call_operand.hbm [shape: f32[4,256], index: 3, kind: output, shape index: {0}]   ;;  %s1873_s4 = inlined_call_operand.hbm [shape: f32[4,256], index: 4, kind: output, shape index: {1}]  }
   0x1   :  { %v979_v0 = vld [vmem:[%s1870_s1 + $0xf8] sm:$0xff]  ;;  %v984_v1 = vld [vmem:[%s1870_s1 + $0xf0] sm:$0xff]  ;;  %v989_v2 = vld [vmem:[%s1870_s1 + $0xe8] sm:$0xff] }
   0x2   :  { %v99_v3 = vmul.f32 %v979_v0, %v979_v0  ;;  %v98_v4 = vmul.f32 %v984_v1, %v984_v1  ;;  %v97_v5 = vmul.f32 %v989_v2, %v989_v2  ;;  %v1000_v6 = vld [vmem:[%s1870_s1 + $0x78] sm:$0xff]  ;;  %v1005_v7 = vld [vmem:[%s1870_s1 + $0x70] sm:$0xff]  ;;  %v1013_v11 = vld [vmem:[%s1870_s1 + $0x68] sm:$0xff] }
   0x3   :  { %v83_v12 = vmul.f32 %v1000_v6, %v1000_v6  ;;  %v82_v13 = vmul.f32 %v1005_v7, %v1005_v7 }
   0x4   :  { %v194_v8 = vsel %vm100_vm0, %v99_v3, 0.0  ;;  %v191_v9 = vsel %vm100_vm0, %v98_v4, 0.0  ;;  %v188_v10 = vsel %vm100_vm0, %v97_v5, 0.0 }
   0x5   :  { %195 = vadd.xlane.f32.xlu0 %v194_v8  ;;  %192 = vadd.xlane.f32.xlu1 %v191_v9 }
   0x6   :  { %189 = vadd.xlane.f32.xlu2 %v188_v10 }
   0x7   :  { %11 = vsyncpa [#allocation5], 0  ;;  %v81_v14 = vmul.f32 %v1013_v11, %v1013_v11  ;;  %v146_v15 = vsel %vm100_vm0, %v83_v12, 0.0  ;;  %v143_v16 = vsel %vm100_vm0, %v82_v13, 0.0  ;;  %v1027_v18 = vld [vmem:[%s1870_s1 + $0xe0] sm:$0xff]  ;;  %v1037_v20 = vld [vmem:[%s1870_s1 + $0xd8] sm:$0xff] }
   0x8   :  { %v1032_v19 = vld [vmem:[%s1870_s1 + $0x60] sm:$0xff]  ;;  %v96_v21 = vmul.f32 %v1027_v18, %v1027_v18  ;;  %v95_v23 = vmul.f32 %v1037_v20, %v1037_v20  ;;  %v1051_v27 = vld [vmem:[%s1870_s1 + $0xd0] sm:$0xff]  ;;  %v1056_v28 = vld [vmem:[%s1870_s1 + $0x58] sm:$0xff]  ;;  %vm52_vm1 = vcmask 257024   ;;  %s774_s6 = sshll.u32 %s1873_s4, 4  ;;  %s950_s7 = smov [#allocation2]   ;;  %s775_s6 = int_to_ptr.hbm [resolvable:$true] %s774_s6 }
   0x9   :  { %v140_v17 = vsel %vm100_vm0, %v81_v14, 0.0  ;;  %v80_v22 = vmul.f32 %v1032_v19, %v1032_v19  ;;  %v1061_v29 = vld [vmem:[%s1870_s1 + $0x50] sm:$0xff]  ;;  %v94_v30 = vmul.f32 %v1051_v27, %v1051_v27  ;;  %v79_v31 = vmul.f32 %v1056_v28, %v1056_v28  ;;  %v1075_v36 = vld [vmem:[%s1870_s1 + $0xc8] sm:$0xff]  ;;  %v1085_v38 = vld [vmem:[%s1870_s1 + $0xc0] sm:$0xff]  ;;  %s761_s8 = sshll.u32 %s950_s7, 4  ;;  %s763_s11 = sshll.u32 %s1872_s3, 4  ;;  %s762_s8 = int_to_ptr.vmem [resolvable:$true] %s761_s8  ;;  %s764_s11 = int_to_ptr.hbm [resolvable:$true] %s763_s11 }
   0xa   :  { %v185_v24 = vsel %vm100_vm0, %v96_v21, 0.0  ;;  %v182_v26 = vsel %vm100_vm0, %v95_v23, 0.0  ;;  %v78_v32 = vmul.f32 %v1061_v29, %v1061_v29  ;;  %v1080_v37 = vld [vmem:[%s1870_s1 + $0x48] sm:$0xff]  ;;  %v93_v39 = vmul.f32 %v1075_v36, %v1075_v36  ;;  %v1099_v45 = vld [vmem:[%s1870_s1 + $0xb8] sm:$0xff]  ;;  %v1104_v46 = vld [vmem:[%s1870_s1 + $0x40] sm:$0xff] }
   0xb   :  { %v137_v25 = vsel %vm100_vm0, %v80_v22, 0.0  ;;  %v179_v33 = vsel %vm100_vm0, %v94_v30, 0.0  ;;  %v134_v34 = vsel %vm100_vm0, %v79_v31, 0.0  ;;  %v77_v40 = vmul.f32 %v1080_v37, %v1080_v37  ;;  %v1109_v47 = vld [vmem:[%s1870_s1 + $0x38] sm:$0xff]  ;;  %v1123_v54 = vld [vmem:[%s1870_s1 + $0xb0] sm:$0xff]  ;;  %v1133_v56 = vld [vmem:[%s1870_s1 + $0xa8] sm:$0xff] }
   0xc   :  { %v131_v35 = vsel %vm100_vm0, %v78_v32, 0.0  ;;  %v92_v41 = vmul.f32 %v1085_v38, %v1085_v38  ;;  %v176_v42 = vsel %vm100_vm0, %v93_v39, 0.0  ;;  %v91_v48 = vmul.f32 %v1099_v45, %v1099_v45  ;;  %v1128_v55 = vld [vmem:[%s1870_s1 + $0x30] sm:$0xff]  ;;  %v1147_v63 = vld [vmem:[%s1870_s1 + $0xa0] sm:$0xff]  ;;  %v1152_v3 = vld [vmem:[%s1870_s1 + $0x28] sm:$0xff] }
   0xd   :  { %147 = vadd.xlane.f32.xlu0 %v146_v15  ;;  %144 = vadd.xlane.f32.xlu1 %v143_v16  ;;  %v128_v43 = vsel %vm100_vm0, %v77_v40, 0.0  ;;  %v76_v49 = vmul.f32 %v1104_v46, %v1104_v46  ;;  %v75_v50 = vmul.f32 %v1109_v47, %v1109_v47  ;;  %v90_v57 = vmul.f32 %v1123_v54, %v1123_v54  ;;  %v1157_v4 = vld [vmem:[%s1870_s1 + $0x20] sm:$0xff]  ;;  %v1171_v14 = vld [vmem:[%s1870_s1 + $0x98] sm:$0xff]  ;;  %v1181_v16 = vld [vmem:[%s1870_s1 + $0x90] sm:$0xff] }
   0xe   :  { %141 = vadd.xlane.f32.xlu2 %v140_v17  ;;  %v173_v44 = vsel %vm100_vm0, %v92_v41, 0.0  ;;  %v170_v51 = vsel %vm100_vm0, %v91_v48, 0.0  ;;  %v74_v58 = vmul.f32 %v1128_v55, %v1128_v55  ;;  %v89_v59 = vmul.f32 %v1133_v56, %v1133_v56  ;;  %v1176_v15 = vld [vmem:[%s1870_s1 + $0x18] sm:$0xff]  ;;  %v1200_v30 = vld [vmem:[%s1870_s1 + $0x10] sm:$0xff]  ;;  %v1205_v31 = vld [vmem:[%s1870_s1 + $0x8] sm:$0xff] }
   0xf   :  { %v125_v52 = vsel %vm100_vm0, %v76_v49, 0.0  ;;  %v122_v53 = vsel %vm100_vm0, %v75_v50, 0.0  ;;  %v167_v60 = vsel %vm100_vm0, %v90_v57, 0.0  ;;  %v88_v5 = vmul.f32 %v1147_v63, %v1147_v63  ;;  %v1219_v41 = vld [vmem:[%s1870_s1 + $0x80] sm:$0xff] }
  0x10   :  { %v119_v61 = vsel %vm100_vm0, %v74_v58, 0.0  ;;  %v164_v62 = vsel %vm100_vm0, %v89_v59, 0.0  ;;  %v73_v8 = vmul.f32 %v1152_v3, %v1152_v3  ;;  %v72_v9 = vmul.f32 %v1157_v4, %v1157_v4 }
  0x11   :  { %v161_v10 = vsel %vm100_vm0, %v88_v5, 0.0  ;;  %v87_v17 = vmul.f32 %v1171_v14, %v1171_v14  ;;  %v71_v21 = vmul.f32 %v1176_v15, %v1176_v15  ;;  %v86_v22 = vmul.f32 %v1181_v16, %v1181_v16 }
  0x12   :  { %v116_v12 = vsel %vm100_vm0, %v73_v8, 0.0  ;;  %v113_v13 = vsel %vm100_vm0, %v72_v9, 0.0 }
  0x13   :  { %v158_v23 = vsel %vm100_vm0, %v87_v17, 0.0 }
  0x15   :  { %186 = vadd.xlane.f32.xlu0 %v185_v24  ;;  %138 = vadd.xlane.f32.xlu1 %v137_v25  ;;  %v110_v24 = vsel %vm100_vm0, %v71_v21, 0.0  ;;  %v155_v25 = vsel %vm100_vm0, %v86_v22, 0.0 }
  0x16   :  { %183 = vadd.xlane.f32.xlu2 %v182_v26  ;;  %v1195_v26 = vld [vmem:[%s1870_s1 + $0x88] sm:$0xff] }
  0x17   :  { %v85_v32 = vmul.f32 %v1195_v26, %v1195_v26 }
  0x1d   :  { %180 = vadd.xlane.f32.xlu1 %v179_v33  ;;  %135 = vadd.xlane.f32.xlu0 %v134_v34  ;;  %v70_v33 = vmul.f32 %v1200_v30, %v1200_v30  ;;  %v69_v34 = vmul.f32 %v1205_v31, %v1205_v31 }
  0x1e   :  { %132 = vadd.xlane.f32.xlu2 %v131_v35  ;;  %v152_v35 = vsel %vm100_vm0, %v85_v32, 0.0 }
  0x1f   :  { %v107_v39 = vsel %vm100_vm0, %v70_v33, 0.0  ;;  %v104_v40 = vsel %vm100_vm0, %v69_v34, 0.0 }
  0x25   :  { %177 = vadd.xlane.f32.xlu0 %v176_v42  ;;  %129 = vadd.xlane.f32.xlu1 %v128_v43  ;;  %v1224_v42 = vld [vmem:[%s1870_s1] sm:$0xff] }
  0x26   :  { %174 = vadd.xlane.f32.xlu2 %v173_v44  ;;  %v1229_v43 = vld [vmem:[%s1869_s0] sm:$0xf]  ;;  %v84_v44 = vmul.f32 %v1219_v41, %v1219_v41  ;;  %v68_v48 = vmul.f32 %v1224_v42, %v1224_v42 }
  0x27   :  { %v51_v49 = vmul.f32 %v1229_v43, %v1229_v43 }
  0x28   :  { %v149_v50 = vsel %vm100_vm0, %v84_v44, 0.0 }
  0x2d   :  { %171 = vadd.xlane.f32.xlu1 %v170_v51  ;;  %126 = vadd.xlane.f32.xlu0 %v125_v52  ;;  %v101_v51 = vsel %vm100_vm0, %v68_v48, 0.0  ;;  %v53_v52 = vsel %vm52_vm1, %v51_v49, 0.0 }
  0x2e   :  { %123 = vadd.xlane.f32.xlu2 %v122_v53 }
  0x35   :  { %168 = vadd.xlane.f32.xlu0 %v167_v60  ;;  %120 = vadd.xlane.f32.xlu1 %v119_v61 }
  0x36   :  { %165 = vadd.xlane.f32.xlu2 %v164_v62 }
  0x3d   :  { %162 = vadd.xlane.f32.xlu1 %v161_v10  ;;  %117 = vadd.xlane.f32.xlu0 %v116_v12 }
  0x3e   :  { %114 = vadd.xlane.f32.xlu2 %v113_v13 }
  0x45   :  { %159 = vadd.xlane.f32.xlu0 %v158_v23  ;;  %111 = vadd.xlane.f32.xlu1 %v110_v24 }
  0x46   :  { %156 = vadd.xlane.f32.xlu2 %v155_v25 }
  0x4d   :  { %153 = vadd.xlane.f32.xlu1 %v152_v35  ;;  %108 = vadd.xlane.f32.xlu0 %v107_v39 }
  0x4e   :  { %105 = vadd.xlane.f32.xlu2 %v104_v40 }
  0x55   :  { %150 = vadd.xlane.f32.xlu0 %v149_v50  ;;  %102 = vadd.xlane.f32.xlu1 %v101_v51 }
  0x56   :  { %54 = vadd.xlane.f32.xlu2 %v53_v52 }
  0x78   :  { %v196_v53 = vpop.xlane.xlu0 %195  ;;  %v193_v57 = vpop.xlane.xlu1 %192 }
  0x79   :  { %v228_v58 = vmax.f32 %v196_v53, 1e-24  ;;  %v227_v59 = vmax.f32 %v193_v57, 1e-24  ;;  %v190_v60 = vpop.xlane.xlu2 %189 }
  0x7a   :  { %v1239_v61 = vmax.f32 %v190_v60, 1e-24 }
  0x7b   :  { %830 = vrsqrt.f32 %v228_v58  ;;  %vm545_vm3 = vweird.f32 %v228_v58  ;;  %vm535_vm5 = vweird.f32 %v227_v59 }
  0x7c   :  { %832 = vrsqrt.f32 %v227_v59  ;;  %vm525_vm8 = vweird.f32 %v1239_v61 }
  0x7d   :  { %834 = vrsqrt.f32 %v1239_v61 }
  0x80   :  { %v148_v62 = vpop.xlane.xlu0 %147  ;;  %v145_v5 = vpop.xlane.xlu1 %144 }
  0x81   :  { %v831_v8 = vpop.eup %830  ;;  %v1242_v9 = vmax.f32 %v148_v62, 1e-24  ;;  %v1244_v10 = vmax.f32 %v145_v5, 1e-24  ;;  %v142_v12 = vpop.xlane.xlu2 %141 }
  0x82   :  { %v1246_v13 = vpop.eup %832  ;;  %v540_v17 = vmul.f32 %v831_v8, %v228_v58  ;;  %v1248_v21 = vmax.f32 %v142_v12, 1e-24  ;;  %vm546_vm2 = vweird.f32 %v831_v8 }
  0x83   :  { %v1250_v22 = vpop.eup %834  ;;  %v530_v23 = vmul.f32 %v1246_v13, %v227_v59  ;;  %836 = vrsqrt.f32 %v1242_v9  ;;  %vm536_vm4 = vweird.f32 %v1246_v13  ;;  %vm547_vm6 = vmor %vm545_vm3, %vm546_vm2  ;;  %vm385_vm12 = vweird.f32 %v1242_v9 }
  0x84   :  { %v541_v24 = vmul.f32 %v831_v8, %v540_v17  ;;  %v520_v25 = vmul.f32 %v1250_v22, %v1239_v61  ;;  %838 = vrsqrt.f32 %v1244_v10  ;;  %vm1286_vm7 = vmor %vm535_vm5, %vm536_vm4  ;;  %vm526_vm9 = vweird.f32 %v1250_v22 }
  0x85   :  { %v531_v32 = vmul.f32 %v1246_v13, %v530_v23  ;;  %840 = vrsqrt.f32 %v1248_v21  ;;  %vm527_vm11 = vmor %vm525_vm8, %vm526_vm9  ;;  %vm375_vm13 = vweird.f32 %v1244_v10  ;;  %vm365_vm14 = vweird.f32 %v1248_v21 }
  0x86   :  { %v542_v33 = vmul.f32 0.5, %v541_v24  ;;  %v521_v34 = vmul.f32 %v1250_v22, %v520_v25 }
  0x87   :  { %v532_v35 = vmul.f32 0.5, %v531_v32 }
  0x88   :  { %v543_v39 = vsub.f32 1.5, %v542_v33  ;;  %v187_v40 = vpop.xlane.xlu0 %186  ;;  %v139_v44 = vpop.xlane.xlu1 %138  ;;  %v522_v49 = vmul.f32 0.5, %v521_v34 }
  0x89   :  { %v1260_v48 = vpop.eup %836  ;;  %v1262_v50 = vmax.f32 %v187_v40, 1e-24  ;;  %v184_v51 = vpop.xlane.xlu2 %183  ;;  %v1264_v52 = vmax.f32 %v139_v44, 1e-24  ;;  %v533_v57 = vsub.f32 1.5, %v532_v35 }
  0x8a   :  { %v1266_v53 = vpop.eup %838  ;;  %v380_v60 = vmul.f32 %v1260_v48, %v1242_v9  ;;  %v1270_v62 = vmax.f32 %v184_v51, 1e-24  ;;  %v544_v5 = vmul.f32 %v831_v8, %v543_v39  ;;  %v523_v58 = vsub.f32 1.5, %v522_v49 }
  0x8b   :  { %v1272_v12 = vpop.eup %840  ;;  %v370_v17 = vmul.f32 %v1266_v53, %v1244_v10  ;;  %842 = vrsqrt.f32 %v1262_v50  ;;  %v534_v34 = vmul.f32 %v1246_v13, %v533_v57  ;;  %vm386_vm10 = vweird.f32 %v1260_v48 }
  0x8c   :  { %v381_v23 = vmul.f32 %v1260_v48, %v380_v60  ;;  %v360_v24 = vmul.f32 %v1272_v12, %v1248_v21  ;;  %844 = vrsqrt.f32 %v1270_v62  ;;  %v548_v33 = vsel %vm547_vm6, %v831_v8, %v544_v5  ;;  %vm387_vm15 = vmor %vm385_vm12, %vm386_vm10 }
  0x8d   :  { %v371_v25 = vmul.f32 %v1266_v53, %v370_v17  ;;  %846 = vrsqrt.f32 %v1264_v52  ;;  %v580_v39 = vmul.f32 %v548_v33, %v979_v0  ;;  %v538_v49 = vsel %vm1286_vm7, %v1246_v13, %v534_v34 }
  0x8e   :  { %v382_v32 = vmul.f32 0.5, %v381_v23  ;;  %v361_v59 = vmul.f32 %v1272_v12, %v360_v24  ;;  %v524_v13 = vmul.f32 %v1250_v22, %v523_v58  ;;  %v579_v34 = vmul.f32 %v538_v49, %v984_v1 }
  0x8f   :  { %v372_v8 = vmul.f32 0.5, %v371_v25  ;;  %805 = vmatpush.xpose.msk.msra.mxu1 %vm100_vm0, %v580_v39  ;;  %vm376_vm1 = vweird.f32 %v1266_v53  ;;  %vm515_vm2 = vweird.f32 %v1262_v50  ;;  %vm366_vm3 = vweird.f32 %v1272_v12 }
  0x90   :  { %v181_v40 = vpop.xlane.xlu1 %180  ;;  %v136_v44 = vpop.xlane.xlu0 %135  ;;  %v383_v17 = vsub.f32 1.5, %v382_v32  ;;  %v362_v35 = vmul.f32 0.5, %v361_v59  ;;  %vm377_vm4 = vmor %vm375_vm13, %vm376_vm1  ;;  %vm505_vm6 = vweird.f32 %v1270_v62  ;;  %vm355_vm8 = vweird.f32 %v1264_v52 }
  0x91   :  { %v1296_v51 = vpop.eup %842  ;;  %v1300_v57 = vmax.f32 %v181_v40, 1e-24  ;;  %v1302_v0 = vmax.f32 %v136_v44, 1e-24  ;;  %v133_v60 = vpop.xlane.xlu2 %132  ;;  %v373_v58 = vsub.f32 1.5, %v372_v8  ;;  %v528_v44 = vsel %vm527_vm11, %v1250_v22, %v524_v13  ;;  %vm1382_vm7 = vmor %vm365_vm14, %vm366_vm3 }
  0x92   :  { %v1304_v5 = vpop.eup %844  ;;  %v510_v23 = vmul.f32 %v1296_v51, %v1262_v50  ;;  %v1308_v24 = vmax.f32 %v133_v60, 1e-24  ;;  %v384_v40 = vmul.f32 %v1260_v48, %v383_v17  ;;  %v578_v9 = vmul.f32 %v528_v44, %v989_v2 }
  0x93   :  { %v1311_v33 = vpop.eup %846  ;;  %v500_v25 = vmul.f32 %v1304_v5, %v1270_v62  ;;  %848 = vrsqrt.f32 %v1300_v57  ;;  %806 = vmatpush.xpose.msk.msra.mxu1 %vm100_vm0, %v579_v34  ;;  %v363_v49 = vsub.f32 1.5, %v362_v35  ;;  %vm516_vm5 = vweird.f32 %v1296_v51 }
  0x94   :  { %v511_v32 = vmul.f32 %v1296_v51, %v510_v23  ;;  %v350_v39 = vmul.f32 %v1311_v33, %v1264_v52  ;;  %850 = vrsqrt.f32 %v1302_v0  ;;  %v388_v8 = vsel %vm387_vm15, %v1260_v48, %v384_v40  ;;  %vm1391_vm9 = vmor %vm515_vm2, %vm516_vm5 }
  0x95   :  { %852 = vrsqrt.f32 %v1308_v24  ;;  %v501_v1 = vmul.f32 %v1304_v5, %v500_v25  ;;  %v564_v13 = vmul.f32 %v388_v8, %v1000_v6  ;;  %v374_v40 = vmul.f32 %v1266_v53, %v373_v58 }
  0x96   :  { %v351_v59 = vmul.f32 %v1311_v33, %v350_v39  ;;  %v512_v61 = vmul.f32 0.5, %v511_v32  ;;  %v364_v58 = vmul.f32 %v1272_v12, %v363_v49  ;;  %vm506_vm10 = vweird.f32 %v1304_v5 }
  0x97   :  { %807 = vmatpush.xpose.msk.msra.mxu1 %vm100_vm0, %v578_v9  ;;  %v502_v35 = vmul.f32 0.5, %v501_v1  ;;  %788 = vmatpush.xpose.msk.msra.mxu0 %vm100_vm0, %v564_v13  ;;  %v378_v13 = vsel %vm377_vm4, %v1266_v53, %v374_v40  ;;  %vm356_vm11 = vweird.f32 %v1311_v33  ;;  %vm495_vm12 = vweird.f32 %v1300_v57  ;;  %vm507_vm14 = vmor %vm505_vm6, %vm506_vm10 }
  0x98   :  { %v178_v60 = vpop.xlane.xlu0 %177  ;;  %v130_v17 = vpop.xlane.xlu1 %129  ;;  %v352_v23 = vmul.f32 0.5, %v351_v59  ;;  %v513_v6 = vsub.f32 1.5, %v512_v61  ;;  %v368_v53 = vsel %vm1382_vm7, %v1272_v12, %v364_v58  ;;  %vm1428_vm13 = vmor %vm355_vm8, %vm356_vm11  ;;  %vm345_vm2 = vweird.f32 %v1302_v0 }
  0x99   :  { %v1341_v22 = vpop.eup %848  ;;  %v1345_v25 = vmax.f32 %v178_v60, 1e-24  ;;  %v175_v34 = vpop.xlane.xlu2 %174  ;;  %v1347_v2 = vmax.f32 %v130_v17, 1e-24  ;;  %v503_v60 = vsub.f32 1.5, %v502_v35  ;;  %v562_v35 = vmul.f32 %v368_v53, %v1013_v11 }
  0x9a   :  { %v1349_v32 = vpop.eup %850  ;;  %v490_v48 = vmul.f32 %v1341_v22, %v1300_v57  ;;  %v1353_v39 = vmax.f32 %v175_v34, 1e-24  ;;  %v353_v61 = vsub.f32 1.5, %v352_v23  ;;  %v563_v23 = vmul.f32 %v378_v13, %v1005_v7 }
  0x9b   :  { %v1356_v59 = vpop.eup %852  ;;  %v340_v44 = vmul.f32 %v1349_v32, %v1302_v0  ;;  %854 = vrsqrt.f32 %v1345_v25  ;;  %v514_v34 = vmul.f32 %v1296_v51, %v513_v6  ;;  %v504_v10 = vmul.f32 %v1304_v5, %v503_v60 }
  0x9c   :  { %v491_v1 = vmul.f32 %v1341_v22, %v490_v48  ;;  %v330_v9 = vmul.f32 %v1356_v59, %v1308_v24  ;;  %856 = vrsqrt.f32 %v1353_v39  ;;  %789 = vmatpush.xpose.msk.msra.mxu0 %vm100_vm0, %v563_v23  ;;  %vm496_vm15 = vweird.f32 %v1341_v22 }
  0x9d   :  { %v341_v8 = vmul.f32 %v1349_v32, %v340_v44  ;;  %858 = vrsqrt.f32 %v1347_v2  ;;  %v518_v50 = vsel %vm1391_vm9, %v1296_v51, %v514_v34  ;;  %vm346_vm1 = vweird.f32 %v1349_v32  ;;  %vm497_vm6 = vmor %vm495_vm12, %vm496_vm15 }
  0x9e   :  { %v331_v17 = vmul.f32 %v1356_v59, %v330_v9  ;;  %v492_v49 = vmul.f32 0.5, %v491_v1  ;;  %v354_v9 = vmul.f32 %v1311_v33, %v353_v61  ;;  %v577_v13 = vmul.f32 %v518_v50, %v1027_v18  ;;  %vm1462_vm3 = vmor %vm345_vm2, %vm346_vm1 }
  0x9f   :  { %v342_v21 = vmul.f32 0.5, %v341_v8  ;;  %v508_v62 = vsel %vm507_vm14, %v1304_v5, %v504_v10  ;;  %vm335_vm4 = vweird.f32 %v1308_v24  ;;  %vm336_vm5 = vweird.f32 %v1356_v59 }
  0xa0   :  { %v172_v48 = vpop.xlane.xlu1 %171  ;;  %v127_v40 = vpop.xlane.xlu0 %126  ;;  %v332_v58 = vmul.f32 0.5, %v331_v17  ;;  %v493_v51 = vsub.f32 1.5, %v492_v49  ;;  %808 = vmatpush.xpose.msk.msra.mxu1 %vm100_vm0, %v577_v13  ;;  %790 = vmatpush.xpose.msk.msra.mxu0 %vm100_vm0, %v562_v35  ;;  %v358_v52 = vsel %vm1428_vm13, %v1311_v33, %v354_v9  ;;  %v576_v50 = vmul.f32 %v508_v62, %v1037_v20  ;;  %vm337_vm7 = vmor %vm335_vm4, %vm336_vm5 }
  0xa1   :  { %v1400_v7 = vpop.eup %854  ;;  %v1407_v6 = vmax.f32 %v172_v48, 1e-24  ;;  %v1409_v44 = vmax.f32 %v127_v40, 1e-24  ;;  %v124_v1 = vpop.xlane.xlu2 %123  ;;  %v343_v18 = vsub.f32 1.5, %v342_v21  ;;  %v561_v40 = vmul.f32 %v358_v52, %v1032_v19 }
  0xa2   :  { %v1412_v12 = vpop.eup %856  ;;  %v480_v8 = vmul.f32 %v1400_v7, %v1345_v25  ;;  %v1444_v11 = vmax.f32 %v124_v1, 1e-24  ;;  %v333_v49 = vsub.f32 1.5, %v332_v58  ;;  %v494_v33 = vmul.f32 %v1341_v22, %v493_v51 }
  0xa3   :  { %v1418_v23 = vpop.eup %858  ;;  %v470_v34 = vmul.f32 %v1412_v12, %v1353_v39  ;;  %860 = vrsqrt.f32 %v1407_v6  ;;  %vm486_vm8 = vweird.f32 %v1400_v7  ;;  %vm485_vm9 = vweird.f32 %v1345_v25 }
  0xa4   :  { %v481_v60 = vmul.f32 %v1400_v7, %v480_v8  ;;  %v320_v17 = vmul.f32 %v1418_v23, %v1347_v2  ;;  %862 = vrsqrt.f32 %v1409_v44  ;;  %v344_v8 = vmul.f32 %v1349_v32, %v343_v18  ;;  %791 = vmatpush.xpose.msk.msra.mxu0 %vm100_vm0, %v561_v40  ;;  %809 = vmatpush.xpose.msk.msra.mxu1 %vm100_vm0, %v576_v50  ;;  %vm1513_vm11 = vmor %vm485_vm9, %vm486_vm8 }
  0xa5   :  { %v471_v21 = vmul.f32 %v1412_v12, %v470_v34  ;;  %864 = vrsqrt.f32 %v1444_v11  ;;  %v334_v61 = vmul.f32 %v1356_v59, %v333_v49  ;;  %v498_v52 = vsel %vm497_vm6, %v1341_v22, %v494_v33 }
  0xa6   :  { %v321_v53 = vmul.f32 %v1418_v23, %v320_v17  ;;  %v482_v48 = vmul.f32 0.5, %v481_v60  ;;  %v348_v35 = vsel %vm1462_vm3, %v1349_v32, %v344_v8  ;;  %vm326_vm10 = vweird.f32 %v1418_v23 }
  0xa7   :  { %v472_v51 = vmul.f32 0.5, %v471_v21  ;;  %v560_v17 = vmul.f32 %v348_v35, %v1056_v28  ;;  %v338_v24 = vsel %vm337_vm7, %v1356_v59, %v334_v61  ;;  %vm325_vm12 = vweird.f32 %v1347_v2 }
  0xa8   :  { %v322_v1 = vmul.f32 0.5, %v321_v53  ;;  %v169_v9 = vpop.xlane.xlu0 %168  ;;  %v121_v58 = vpop.xlane.xlu1 %120  ;;  %v483_v18 = vsub.f32 1.5, %v482_v48  ;;  %v575_v53 = vmul.f32 %v498_v52, %v1051_v27  ;;  %v559_v48 = vmul.f32 %v338_v24, %v1061_v29  ;;  %vm327_vm14 = vmor %vm325_vm12, %vm326_vm10 }
  0xa9   :  { %v1458_v13 = vpop.eup %860  ;;  %v1470_v19 = vmax.f32 %v169_v9, 1e-24  ;;  %v166_v20 = vpop.xlane.xlu2 %165  ;;  %v1472_v0 = vmax.f32 %v121_v58, 1e-24  ;;  %792 = vmatpush.xpose.msk.msra.mxu0 %vm100_vm0, %v560_v17  ;;  %v473_v32 = vsub.f32 1.5, %v472_v51  ;;  %vm476_vm13 = vweird.f32 %v1412_v12 }
  0xaa   :  { %v1474_v10 = vpop.eup %862  ;;  %v460_v34 = vmul.f32 %v1458_v13, %v1407_v6  ;;  %v323_v57 = vsub.f32 1.5, %v322_v1  ;;  %v1502_v22 = vmax.f32 %v166_v20, 1e-24  ;;  %810 = vmatpush.xpose.msk.msra.mxu1 %vm100_vm0, %v575_v53  ;;  %v484_v1 = vmul.f32 %v1400_v7, %v483_v18 }
  0xab   :  { %v310_v60 = vmul.f32 %v1474_v10, %v1409_v44  ;;  %866 = vrsqrt.f32 %v1470_v19  ;;  %v1493_v62 = vpop.eup %864  ;;  %v474_v17 = vmul.f32 %v1412_v12, %v473_v32  ;;  %vm475_vm15 = vweird.f32 %v1353_v39 }
  0xac   :  { %v461_v21 = vmul.f32 %v1458_v13, %v460_v34  ;;  %868 = vrsqrt.f32 %v1472_v0  ;;  %v300_v27 = vmul.f32 %v1493_v62, %v1444_v11  ;;  %v324_v50 = vmul.f32 %v1418_v23, %v323_v57  ;;  %vm477_vm3 = vmor %vm475_vm15, %vm476_vm13 }
  0xad   :  { %v311_v28 = vmul.f32 %v1474_v10, %v310_v60  ;;  %870 = vrsqrt.f32 %v1502_v22  ;;  %793 = vmatpush.xpose.msk.msra.mxu0 %vm100_vm0, %v559_v48  ;;  %v488_v51 = vsel %vm1513_vm11, %v1400_v7, %v484_v1  ;;  %vm466_vm1 = vweird.f32 %v1458_v13 }
  0xae   :  { %v462_v25 = vmul.f32 0.5, %v461_v21  ;;  %v301_v29 = vmul.f32 %v1493_v62, %v300_v27  ;;  %v328_v20 = vsel %vm327_vm14, %v1418_v23, %v324_v50  ;;  %v574_v60 = vmul.f32 %v488_v51, %v1075_v36 }
  0xaf   :  { %v312_v49 = vmul.f32 0.5, %v311_v28  ;;  %v558_v18 = vmul.f32 %v328_v20, %v1080_v37  ;;  %vm316_vm2 = vweird.f32 %v1474_v10  ;;  %vm465_vm4 = vweird.f32 %v1407_v6 }
  0xb0   :  { %v163_v8 = vpop.xlane.xlu1 %162  ;;  %v118_v33 = vpop.xlane.xlu0 %117  ;;  %v463_v23 = vsub.f32 1.5, %v462_v25  ;;  %811 = vmatpush.xpose.msk.msra.mxu1 %vm100_vm0, %v574_v60  ;;  %v302_v36 = vmul.f32 0.5, %v301_v29  ;;  %vm315_vm5 = vweird.f32 %v1409_v44  ;;  %v478_v21 = vsel %vm477_vm3, %v1412_v12, %v474_v17  ;;  %vm467_vm7 = vmor %vm465_vm4, %vm466_vm1 }
  0xb1   :  { %v1525_v59 = vmax.f32 %v163_v8, 1e-24  ;;  %v1527_v9 = vmax.f32 %v118_v33, 1e-24  ;;  %v115_v2 = vpop.xlane.xlu2 %114  ;;  %v1529_v58 = vpop.eup %866  ;;  %v313_v5 = vsub.f32 1.5, %v312_v49  ;;  %794 = vmatpush.xpose.msk.msra.mxu0 %vm100_vm0, %v558_v18  ;;  %vm1566_vm6 = vmor %vm315_vm5, %vm316_vm2  ;;  %v573_v32 = vmul.f32 %v478_v21, %v1085_v38 }
  0xb2   :  { %v1535_v34 = vmax.f32 %v115_v2, 1e-24  ;;  %v1537_v35 = vpop.eup %868  ;;  %v450_v61 = vmul.f32 %v1529_v58, %v1470_v19  ;;  %v464_v49 = vmul.f32 %v1458_v13, %v463_v23  ;;  %vm305_vm8 = vweird.f32 %v1444_v11 }
  0xb3   :  { %v290_v52 = vmul.f32 %v1537_v35, %v1472_v0  ;;  %872 = vrsqrt.f32 %v1525_v59  ;;  %v1548_v7 = vpop.eup %870  ;;  %v314_v53 = vmul.f32 %v1474_v10, %v313_v5  ;;  %v303_v38 = vsub.f32 1.5, %v302_v36 }
  0xb4   :  { %v451_v37 = vmul.f32 %v1529_v58, %v450_v61  ;;  %874 = vrsqrt.f32 %v1527_v9  ;;  %v440_v39 = vmul.f32 %v1548_v7, %v1502_v22  ;;  %812 = vmatpush.xpose.msk.msra.mxu1 %vm100_vm0, %v573_v32  ;;  %v468_v8 = vsel %vm467_vm7, %v1458_v13, %v464_v49 }
  0xb5   :  { %v291_v57 = vmul.f32 %v1537_v35, %v290_v52  ;;  %876 = vrsqrt.f32 %v1535_v34  ;;  %v318_v44 = vsel %vm1566_vm6, %v1474_v10, %v314_v53  ;;  %vm455_vm9 = vweird.f32 %v1470_v19 }
  0xb6   :  { %v452_v27 = vmul.f32 0.5, %v451_v37  ;;  %v441_v6 = vmul.f32 %v1548_v7, %v440_v39  ;;  %v557_v1 = vmul.f32 %v318_v44, %v1104_v46  ;;  %v572_v2 = vmul.f32 %v468_v8, %v1099_v45 }
  0xb7   :  { %v292_v24 = vmul.f32 0.5, %v291_v57  ;;  %vm306_vm10 = vweird.f32 %v1493_v62  ;;  %vm296_vm11 = vweird.f32 %v1537_v35  ;;  %v304_v17 = vmul.f32 %v1493_v62, %v303_v38 }
  0xb8   :  { %v160_v48 = vpop.xlane.xlu0 %159  ;;  %v112_v40 = vpop.xlane.xlu1 %111  ;;  %v453_v46 = vsub.f32 1.5, %v452_v27  ;;  %795 = vmatpush.xpose.msk.msra.mxu0 %vm100_vm0, %v557_v1  ;;  %v442_v51 = vmul.f32 0.5, %v441_v6  ;;  %813 = vmatpush.xpose.msk.msra.mxu1 %vm100_vm0, %v572_v2  ;;  %vm1613_vm12 = vmor %vm305_vm8, %vm306_vm10  ;;  %vm456_vm13 = vweird.f32 %v1529_v58  ;;  %vm445_vm14 = vweird.f32 %v1502_v22 }
  0xb9   :  { %v1579_v12 = vmax.f32 %v160_v48, 1e-24  ;;  %v157_v25 = vpop.xlane.xlu2 %156  ;;  %v1581_v50 = vpop.eup %872  ;;  %v1586_v33 = vmax.f32 %v112_v40, 1e-24  ;;  %v293_v20 = vsub.f32 1.5, %v292_v24  ;;  %vm295_vm15 = vweird.f32 %v1472_v0  ;;  %vm457_vm4 = vmor %vm455_vm9, %vm456_vm13 }
  0xba   :  { %v1588_v29 = vpop.eup %874  ;;  %v430_v10 = vmul.f32 %v1581_v50, %v1525_v59  ;;  %v1603_v18 = vmax.f32 %v157_v25, 1e-24  ;;  %vm285_vm1 = vweird.f32 %v1527_v9  ;;  %v308_v37 = vsel %vm1613_vm12, %v1493_v62, %v304_v17  ;;  %vm297_vm2 = vmor %vm295_vm15, %vm296_vm11 }
  0xbb   :  { %878 = vrsqrt.f32 %v1579_v12  ;;  %v1595_v5 = vpop.eup %876  ;;  %v280_v13 = vmul.f32 %v1588_v29, %v1527_v9  ;;  %v294_v11 = vmul.f32 %v1537_v35, %v293_v20  ;;  %v454_v36 = vmul.f32 %v1529_v58, %v453_v46 }
  0xbc   :  { %v431_v61 = vmul.f32 %v1581_v50, %v430_v10  ;;  %v270_v60 = vmul.f32 %v1595_v5, %v1535_v34  ;;  %880 = vrsqrt.f32 %v1586_v33  ;;  %v443_v53 = vsub.f32 1.5, %v442_v51 }
  0xbd   :  { %v281_v45 = vmul.f32 %v1588_v29, %v280_v13  ;;  %882 = vrsqrt.f32 %v1603_v18  ;;  %vm435_vm3 = vweird.f32 %v1525_v59  ;;  %v556_v28 = vmul.f32 %v308_v37, %v1109_v47 }
  0xbe   :  { %v432_v0 = vmul.f32 0.5, %v431_v61  ;;  %vm446_vm5 = vweird.f32 %v1548_v7  ;;  %v271_v24 = vmul.f32 %v1595_v5, %v270_v60  ;;  %v298_v49 = vsel %vm297_vm2, %v1537_v35, %v294_v11 }
  0xbf   :  { %v282_v52 = vmul.f32 0.5, %v281_v45  ;;  %vm436_vm6 = vweird.f32 %v1581_v50  ;;  %796 = vmatpush.xpose.msk.msra.mxu0 %vm100_vm0, %v556_v28  ;;  %v555_v47 = vmul.f32 %v298_v49, %v1128_v55  ;;  %v458_v48 = vsel %vm457_vm4, %v1529_v58, %v454_v36  ;;  %vm1672_vm9 = vmor %vm445_vm14, %vm446_vm5 }
  0xc0   :  { %v154_v39 = vpop.xlane.xlu1 %153  ;;  %v109_v57 = vpop.xlane.xlu0 %108  ;;  %v571_v44 = vmul.f32 %v458_v48, %v1123_v54  ;;  %v433_v38 = vsub.f32 1.5, %v432_v0  ;;  %v444_v58 = vmul.f32 %v1548_v7, %v443_v53  ;;  %vm286_vm7 = vweird.f32 %v1588_v29  ;;  %vm1706_vm15 = vmor %vm435_vm3, %vm436_vm6 }
  0xc1   :  { %v1627_v21 = vpop.eup %878  ;;  %v1633_v27 = vmax.f32 %v154_v39, 1e-24  ;;  %v106_v62 = vpop.xlane.xlu2 %105  ;;  %v283_v40 = vsub.f32 1.5, %v282_v52  ;;  %v1653_v25 = vmax.f32 %v109_v57, 1e-24  ;;  %v272_v8 = vmul.f32 0.5, %v271_v24  ;;  %vm1693_vm13 = vmor %vm285_vm1, %vm286_vm7 }
  0xc2   :  { %v420_v32 = vmul.f32 %v1627_v21, %v1579_v12  ;;  %v1649_v19 = vpop.eup %880  ;;  %v1659_v55 = vmax.f32 %v106_v62, 1e-24  ;;  %vm275_vm8 = vweird.f32 %v1535_v34  ;;  %814 = vmatpush.xpose.msk.msra.mxu1 %vm100_vm0, %v571_v44  ;;  %vm276_vm10 = vweird.f32 %v1595_v5 }
  0xc3   :  { %884 = vrsqrt.f32 %v1633_v27  ;;  %v1655_v35 = vpop.eup %882  ;;  %v260_v1 = vmul.f32 %v1649_v19, %v1586_v33  ;;  %vm426_vm11 = vweird.f32 %v1627_v21  ;;  %797 = vmatpush.xpose.msk.msra.mxu0 %vm100_vm0, %v555_v47  ;;  %vm425_vm12 = vweird.f32 %v1579_v12  ;;  %vm277_vm5 = vmor %vm275_vm8, %vm276_vm10 }
  0xc4   :  { %v421_v6 = vmul.f32 %v1627_v21, %v420_v32  ;;  %v410_v54 = vmul.f32 %v1655_v35, %v1603_v18  ;;  %886 = vrsqrt.f32 %v1653_v25  ;;  %v448_v22 = vsel %vm1672_vm9, %v1548_v7, %v444_v58  ;;  %vm1759_vm8 = vmor %vm425_vm12, %vm426_vm11 }
  0xc5   :  { %v261_v2 = vmul.f32 %v1649_v19, %v260_v1  ;;  %888 = vrsqrt.f32 %v1659_v55  ;;  %v284_v13 = vmul.f32 %v1588_v29, %v283_v40  ;;  %vm265_vm14 = vweird.f32 %v1586_v33 }
  0xc6   :  { %v422_v46 = vmul.f32 0.5, %v421_v6  ;;  %v411_v20 = vmul.f32 %v1655_v35, %v410_v54  ;;  %v570_v17 = vmul.f32 %v448_v22, %v1133_v56  ;;  %v434_v7 = vmul.f32 %v1581_v50, %v433_v38 }
  0xc7   :  { %v262_v60 = vmul.f32 0.5, %v261_v2  ;;  %v273_v9 = vsub.f32 1.5, %v272_v8  ;;  %v288_v56 = vsel %vm1693_vm13, %v1588_v29, %v284_v13  ;;  %vm415_vm1 = vweird.f32 %v1603_v18 }
  0xc8   :  { %v151_v51 = vpop.xlane.xlu0 %150  ;;  %v412_v37 = vmul.f32 0.5, %v411_v20  ;;  %v103_v36 = vpop.xlane.xlu1 %102  ;;  %vm266_vm2 = vweird.f32 %v1649_v19  ;;  %815 = vmatpush.xpose.msk.msra.mxu1 %vm100_vm0, %v570_v17  ;;  %v554_v59 = vmul.f32 %v288_v56, %v1152_v3  ;;  %v438_v57 = vsel %vm1706_vm15, %v1581_v50, %v434_v7 }
  0xc9   :  { %v1687_v61 = vpop.eup %884  ;;  %v1700_v23 = vmax.f32 %v151_v51, 1e-24  ;;  %v55_v39 = vpop.xlane.xlu2 %54  ;;  %v423_v0 = vsub.f32 1.5, %v422_v46  ;;  %vm416_vm3 = vweird.f32 %v1655_v35  ;;  %vm405_vm4 = vweird.f32 %v1633_v27  ;;  %vm267_vm9 = vmor %vm265_vm14, %vm266_vm2 }
  0xca   :  { %v400_v11 = vmul.f32 %v1687_v61, %v1633_v27  ;;  %v1723_v53 = vpop.eup %886  ;;  %v569_v28 = vmul.f32 %v438_v57, %v1147_v63  ;;  %v263_v3 = vsub.f32 1.5, %v262_v60  ;;  %798 = vmatpush.xpose.msk.msra.mxu0 %vm100_vm0, %v554_v59  ;;  %v1734_v50 = vmax.f32 %v103_v36, 1e-24  ;;  %vm1784_vm11 = vmor %vm415_vm1, %vm416_vm3 }
  0xcb   :  { %890 = vrsqrt.f32 %v1700_v23  ;;  %v1729_v62 = vpop.eup %888  ;;  %v250_v24 = vmul.f32 %v1723_v53, %v1653_v25  ;;  %v1736_v32 = vmax.f32 %v55_v39, 1e-24  ;;  %v413_v49 = vsub.f32 1.5, %v412_v37 }
  0xcc   :  { %v401_v29 = vmul.f32 %v1687_v61, %v400_v11  ;;  %v240_v48 = vmul.f32 %v1729_v62, %v1659_v55  ;;  %v274_v40 = vmul.f32 %v1595_v5, %v273_v9  ;;  %vm406_vm6 = vweird.f32 %v1687_v61  ;;  %816 = vmatpush.xpose.msk.msra.mxu1 %vm100_vm0, %v569_v28 }
  0xcd   :  { %v251_v63 = vmul.f32 %v1723_v53, %v250_v24  ;;  %vm255_vm7 = vweird.f32 %v1653_v25  ;;  %892 = vrsqrt.f32 %v1734_v50  ;;  %v264_v54 = vmul.f32 %v1649_v19, %v263_v3  ;;  %vm1798_vm12 = vmor %vm405_vm4, %vm406_vm6 }
  0xce   :  { %v402_v47 = vmul.f32 0.5, %v401_v29  ;;  %v241_v44 = vmul.f32 %v1729_v62, %v240_v48  ;;  %894 = vrsqrt.f32 %v1736_v32  ;;  %v278_v38 = vsel %vm277_vm5, %v1595_v5, %v274_v40 }
  0xcf   :  { %v252_v58 = vmul.f32 0.5, %v251_v63  ;;  %v553_v8 = vmul.f32 %v278_v38, %v1157_v4  ;;  %v424_v10 = vmul.f32 %v1627_v21, %v423_v0  ;;  %vm256_vm10 = vweird.f32 %v1723_v53 }
  0xd0   :  { %v403_v6 = vsub.f32 1.5, %v402_v47  ;;  %v242_v5 = vmul.f32 0.5, %v241_v44  ;;  %v414_v2 = vmul.f32 %v1655_v35, %v413_v49  ;;  %v268_v4 = vsel %vm267_vm9, %v1649_v19, %v264_v54  ;;  %vm1811_vm14 = vmor %vm255_vm7, %vm256_vm10 }
  0xd1   :  { %v1753_v1 = vpop.eup %890  ;;  %v253_v46 = vsub.f32 1.5, %v252_v58  ;;  %799 = vmatpush.xpose.msk.msra.mxu0 %vm100_vm0, %v553_v8  ;;  %v428_v20 = vsel %vm1759_vm8, %v1627_v21, %v424_v10  ;;  %v552_v45 = vmul.f32 %v268_v4, %v1176_v15  ;;  %v731_v21 = vld [vmem:[%s1871_s2] sm:$0xf]  ;;  %vm245_vm13 = vweird.f32 %v1659_v55  ;;  %s949_s2 = smov [#allocation4]  }
  0xd2   :  { %v390_v12 = vmul.f32 %v1753_v1, %v1700_v23  ;;  %v404_v33 = vmul.f32 %v1687_v61, %v403_v6  ;;  %v243_v13 = vsub.f32 1.5, %v242_v5  ;;  %v568_v19 = vmul.f32 %v428_v20, %v1171_v14  ;;  %s772_s29 = sshll.u32 %s949_s2, 4  ;;  %s773_s29 = int_to_ptr.vmem [resolvable:$true] %s772_s29 }
  0xd3   :  { %v893_v60 = vpop.eup %892  ;;  %v418_v15 = vsel %vm1784_vm11, %v1655_v35, %v414_v2  ;;  %v254_v14 = vmul.f32 %v1723_v53, %v253_v46  ;;  %vm246_vm15 = vweird.f32 %v1729_v62  ;;  %v948_v9 = vmov 0  }
  0xd4   :  { %v391_v51 = vmul.f32 %v1753_v1, %v390_v12  ;;  %v895_v17 = vpop.eup %894  ;;  %v230_v52 = vmul.f32 %v893_v60, %v1734_v50  ;;  %817 = vmatpush.xpose.msk.msra.mxu1 %vm100_vm0, %v568_v19  ;;  %v408_v35 = vsel %vm1798_vm12, %v1687_v61, %v404_v33  ;;  %829 = vset.pattern.permute.xlu0 %v948_v9  ;;  %vm396_vm1 = vweird.f32 %v1753_v1  ;;  %vm1834_vm2 = vmor %vm245_vm13, %vm246_vm15 }
  0xd5   :  { %v58_v25 = vmul.f32 %v895_v17, %v1736_v32  ;;  %800 = vmatpush.xpose.msk.msra.mxu0 %vm100_vm0, %v552_v45  ;;  %v567_v37 = vmul.f32 %v418_v15, %v1181_v16  ;;  %v258_v11 = vsel %vm1811_vm14, %v1723_v53, %v254_v14  ;;  %735 = vperm.xlu0 %829, %v731_v21   ;;  %vm395_vm3 = vweird.f32 %v1700_v23 }
  0xd6   :  { %v392_v27 = vmul.f32 0.5, %v391_v51  ;;  %v231_v36 = vmul.f32 %v893_v60, %v230_v52  ;;  %v551_v39 = vmul.f32 %v258_v11, %v1200_v30  ;;  %v244_v61 = vmul.f32 %v1729_v62, %v243_v13  ;;  %vm397_vm4 = vmor %vm395_vm3, %vm396_vm1 }
  0xd7   :  { %v59_v16 = vmul.f32 %v895_v17, %v58_v25  ;;  %v566_v53 = vmul.f32 %v408_v35, %v1195_v26  ;;  %vm236_vm5 = vweird.f32 %v893_v60  ;;  %vm64_vm6 = vweird.f32 %v895_v17 }
  0xd8   :  { %v393_v56 = vsub.f32 1.5, %v392_v27  ;;  %v232_v57 = vmul.f32 0.5, %v231_v36  ;;  %818 = vmatpush.xpose.msk.msra.mxu1 %vm100_vm0, %v567_v37  ;;  %v248_v30 = vsel %vm1834_vm2, %v1729_v62, %v244_v61  ;;  %vm235_vm7 = vweird.f32 %v1734_v50 }
  0xd9   :  { %v60_v55 = vmul.f32 0.5, %v59_v16  ;;  %801 = vmatpush.xpose.msk.msra.mxu0 %vm100_vm0, %v551_v39  ;;  %v550_v26 = vmul.f32 %v248_v30, %v1205_v31  ;;  %vm237_vm8 = vmor %vm235_vm7, %vm236_vm5  ;;  %vm63_vm9 = vweird.f32 %v1736_v32  ;;  %vm746_vm11 = vcmask 1043456  }
  0xda   :  { %v394_v0 = vmul.f32 %v1753_v1, %v393_v56  ;;  %v233_v29 = vsub.f32 1.5, %v232_v57  ;;  %vm65_vm10 = vmor %vm63_vm9, %vm64_vm6 }
  0xdb   :  { %v61_v28 = vsub.f32 1.5, %v60_v55 }
  0xdc   :  { %v398_v23 = vsel %vm397_vm4, %v1753_v1, %v394_v0  ;;  %v234_v3 = vmul.f32 %v893_v60, %v233_v29  ;;  %819 = vmatpush.xpose.msk.msra.mxu1 %vm100_vm0, %v566_v53 }
  0xdd   :  { %v565_v62 = vmul.f32 %v398_v23, %v1219_v41  ;;  %v62_v24 = vmul.f32 %v895_v17, %v61_v28  ;;  %802 = vmatpush.xpose.msk.msra.mxu0 %vm100_vm0, %v550_v26  ;;  %v724_v41 = vlaneseq }
  0xde   :  { %v238_v49 = vsel %vm237_vm8, %v893_v60, %v234_v3 }
  0xdf   :  { %v549_v47 = vmul.f32 %v238_v49, %v1224_v42  ;;  %v66_v48 = vsel %vm65_vm10, %v895_v17, %v62_v24  ;;  %v725_v50 = vand.u32 127, %v724_v41 }
  0xe0   :  { %820 = vmatpush.xpose.msk.msra.mxu1 %vm100_vm0, %v565_v62  ;;  %v67_v31 = vmul.f32 %v66_v48, %v1229_v43 }
  0xe1   :  { %803 = vmatpush.xpose.msk.msra.mxu0 %vm100_vm0, %v549_v47  ;;  %v726_v40 = vadd.s32 128, %v725_v50 }
  0xe3   :  { %821 = vmatmul.msk.f32.vlgmr.msra.gmra.mxu1 %vm100_vm0, %v67_v31 }
  0xe4   :  { %804 = vmatmul.msk.f32.vlgmr.msra.gmra.mxu0 %vm100_vm0, %v67_v31 }
 0x147   :  { %v736_v44 = vpop.permute.xlu0 %735 }
 0x148   :  { %vm738_vm12 = vcmp.eq.s32.totalorder %v726_v40, %v736_v44  ;;  %vm737_vm0 = vcmp.eq.s32.totalorder %v725_v50, %v736_v44 }
 0x160   :  { %v717_v32 = vpop.f32.mrf.mxu1 }
 0x161   :  { %v697_v63 = vpop.f32.mrf.mxu0  ;;  %v823_v6 = vclamps-f32 %v717_v32, 0.9999999 }
 0x162   :  { %v822_v42 = vclamps-f32 %v697_v63, 0.9999999 }
 0x163   :  { %v733_v43 = vmul.f32 30.0, %v823_v6  ;;  %v745_v38 = vrot.slane %v823_v6, 4 }
 0x164   :  { %v732_v1 = vmul.f32 30.0, %v822_v42 }
 0x165   :  { %v825_v34 = vadd.f32 -7.5, %v733_v43  ;;  %v747_v58 = vsel %vm746_vm11, %v822_v42, %v745_v38 }
 0x166   :  { %v824_v8 = vadd.f32 -7.5, %v732_v1  ;;  %749 = vst [vmem:[#allocation4] sm:$0xff] %v747_v58 }
 0x167   :  { %v742_v54 = vsel %vm738_vm12, %v825_v34, %v733_v43  ;;  %777 = dma.vmem_to_hbm [thread:$0]  %s773_s29, 128, %s775_s6, [#allocation5]  }
 0x168   :  { %v752_v10 = vrot.slane %v742_v54, 4  ;;  %v741_v5 = vsel %vm737_vm0, %v824_v8, %v732_v1 }
 0x16a   :  { %v753_v12 = vsel %vm746_vm11, %v741_v5, %v752_v10 }
 0x16b   :  { %755 = vst [vmem:[#allocation2] sm:$0xff] %v753_v12 }
 0x16c   :  { %766 = dma.vmem_to_hbm [thread:$0]  %s762_s8, 128, %s764_s11, [#allocation3]  }
 0x16d   :  { %944 = dma.done.wait [#allocation3], 128  }
 0x16e   :  { %945 = vsyncadd [#allocation3], 4294967168 }
 0x16f   :  { %946 = dma.done.wait [#allocation5], 128  }
 0x170   :  { %947 = vsyncadd [#allocation5], 4294967168 }
 0x171   :  { %786 = vsyncpa [#allocation3], 1 }
 0x172   :  { %787 = vsyncpa [#allocation5], 1 }

</bundles_post_ra>
